<compile_context>
chip_gen: v7x
topology: tpu7x:2x2x1
jax: 0.10.0
libtpu: 0.0.40
codegen_flags: <defaults>
</compile_context>

<pallas_src>
import functools

import jax
import jax.numpy as jnp
from jax.experimental import pallas as pl
from jax.experimental.pallas import tpu as pltpu

LN_EPS = 1e-5  # PyTorch nn.LayerNorm default


def _patch_embed_kernel(x_ref, w_ref, b_ref, g_ref, beta_ref, o_ref):
    # x_ref:    (tm, K)  bf16 patch rows (one M tile)
    # w_ref:    (K, E)   bf16 conv weight, reshaped/transposed (resident)
    # b_ref, g_ref, beta_ref: (1, E) f32 (resident)
    # o_ref:    (tm, E)
    # MXU: bf16 x bf16 -> f32 accumulate.
    y = jnp.dot(x_ref[...], w_ref[...], preferred_element_type=jnp.float32)
    y = y + b_ref[...]

    # LayerNorm over the embedding dim, all in f32 (VPU for sums, EUP rsqrt).
    mean = jnp.mean(y, axis=-1, keepdims=True)
    centered = y - mean
    var = jnp.mean(centered * centered, axis=-1, keepdims=True)
    y_norm = centered * jax.lax.rsqrt(var + LN_EPS)
    out = y_norm * g_ref[...] + beta_ref[...]
    o_ref[...] = out.astype(o_ref.dtype)


def _round_up(x, m):
    return (x + m - 1) // m * m


@functools.partial(
    jax.jit, static_argnames=("patch_size", "block_m", "compute_dtype"))
def patch_embed_forward(x, w_conv, b_conv, ln_gamma, ln_beta, *,
                        patch_size, block_m=512,
                        compute_dtype=jnp.bfloat16):
    """Forward pass of PatchEmbed (conv-as-matmul + fused LayerNorm).

    Args:
      x:        (B, C, H, W)  NCHW, like the PyTorch module.
      w_conv:   (E, C, ph, pw) Conv2d weight.
      b_conv:   (E,)           Conv2d bias.
      ln_gamma: (E,)           LayerNorm weight.
      ln_beta:  (E,)           LayerNorm bias.
      patch_size: (ph, pw).
      block_m:  row-tile size (multiple of 16 for bf16 sublane packing).
      compute_dtype: MXU operand dtype (bf16 fast path).
    Returns:
      (out, (Hp, Wp)) with out of shape (B, Hp*Wp, E).
    """
    ph, pw = patch_size
    B, C, H, W = x.shape
    E = w_conv.shape[0]
    Hp, Wp = H // ph, W // pw
    num_patches = Hp * Wp
    K = C * ph * pw
    M = B * num_patches

    # Cast before the patch transpose so the materialized (M, K) matrix is bf16.
    x_c = x.astype(compute_dtype)
    # (B, C, Hp, ph, Wp, pw) -> (B, Hp, Wp, C, ph, pw) -> (M, K)
    patches = (x_c.reshape(B, C, Hp, ph, Wp, pw)
               .transpose(0, 2, 4, 1, 3, 5)
               .reshape(M, K))
    # Conv weight (E, C, ph, pw) -> (K, E) so patch-row @ weight == conv output.
    w_mat = w_conv.astype(compute_dtype).reshape(E, K).T

    b_row = b_conv.reshape(1, E).astype(jnp.float32)
    g_row = ln_gamma.reshape(1, E).astype(jnp.float32)
    beta_row = ln_beta.reshape(1, E).astype(jnp.float32)

    # Tile the M axis; pad M up to a tile multiple (pad rows are zeros -> LN
    # of them is finite and they are sliced off below).
    tm = min(block_m, _round_up(M, 16))
    m_pad = _round_up(M, tm)
    if m_pad != M:
        patches = jnp.pad(patches, ((0, m_pad - M), (0, 0)))
    grid = (m_pad // tm,)

    out_dtype = x.dtype
    cd_bytes = jnp.dtype(compute_dtype).itemsize
    cost = pl.CostEstimate(
        flops=2 * m_pad * K * E,
        transcendentals=m_pad,  # one rsqrt per patch row
        bytes_accessed=(m_pad * K * cd_bytes
                        + K * E * cd_bytes
                        + 3 * E * 4
                        + m_pad * E * jnp.dtype(out_dtype).itemsize),
    )

    out_flat = pl.pallas_call(
        _patch_embed_kernel,
        out_shape=jax.ShapeDtypeStruct((m_pad, E), out_dtype),
        grid_spec=pltpu.PrefetchScalarGridSpec(
            num_scalar_prefetch=0,
            grid=grid,
            in_specs=[
                # Streaming patch rows: one (tm, K) tile per grid step.
                pl.BlockSpec((tm, K), lambda i: (i, 0)),
                # Weight / bias / LN params: constant index_map -> resident.
                pl.BlockSpec((K, E), lambda i: (0, 0)),
                pl.BlockSpec((1, E), lambda i: (0, 0)),
                pl.BlockSpec((1, E), lambda i: (0, 0)),
                pl.BlockSpec((1, E), lambda i: (0, 0)),
            ],
            # Full-E output block (lane-dense stores for real E >= 128).
            out_specs=pl.BlockSpec((tm, E), lambda i: (i, 0)),
        ),
        compiler_params=pltpu.CompilerParams(
            dimension_semantics=("parallel",)),  # shards across v7x's 2 TCs
        cost_estimate=cost,
    )(patches, w_mat, b_row, g_row, beta_row)

    out = out_flat[:M].reshape(B, num_patches, E)
    return out, (Hp, Wp)


def _reference(x, w_conv, b_conv, ln_gamma, ln_beta, patch_size,
               compute_dtype=None):
    """Pure-JAX reference (conv + layernorm). Optionally quantizes the conv
    inputs to `compute_dtype` to match the kernel's MXU operand rounding."""
    xr, wr = x, w_conv
    if compute_dtype is not None:
        xr = xr.astype(compute_dtype)
        wr = wr.astype(compute_dtype)
    y = jax.lax.conv_general_dilated(
        xr.astype(jnp.float32), wr.astype(jnp.float32),
        window_strides=patch_size, padding="VALID",
        dimension_numbers=("NCHW", "OIHW", "NCHW"),
        precision=jax.lax.Precision.HIGHEST,
    ) + b_conv.astype(jnp.float32).reshape(1, -1, 1, 1)
    B, E, Hp, Wp = y.shape
    y = y.reshape(B, E, Hp * Wp).transpose(0, 2, 1)
    mean = jnp.mean(y, axis=-1, keepdims=True)
    var = jnp.mean((y - mean) ** 2, axis=-1, keepdims=True)
    y = (y - mean) * jax.lax.rsqrt(var + LN_EPS)
    y = y * ln_gamma.astype(jnp.float32) + ln_beta.astype(jnp.float32)
    return y, (Hp, Wp)


if __name__ == "__main__":
    # Small, consistent shapes: img_size=16, patch_size=4, in_chans=4, embed_dim=32.
    B, C, H, W = 2, 4, 16, 16
    ph, pw = 4, 4
    E = 32

    key = jax.random.PRNGKey(0)
    kx, kw, kb, kg, kbt = jax.random.split(key, 5)

    x = jax.random.normal(kx, (B, C, H, W), dtype=jnp.float32)
    w_conv = jax.random.normal(kw, (E, C, ph, pw), dtype=jnp.float32) * 0.05
    b_conv = jax.random.normal(kb, (E,), dtype=jnp.float32) * 0.01
    ln_gamma = jnp.ones((E,), dtype=jnp.float32) + 0.1 * jax.random.normal(kg, (E,))
    ln_beta = 0.1 * jax.random.normal(kbt, (E,), dtype=jnp.float32)

    # block_m=16 so the tiny demo (M = 2*16 = 32 rows) still exercises a
    # multi-step, pipelined grid (grid=(2,)).  Real shapes use the default 512.
    out, (Hp, Wp) = patch_embed_forward(
        x, w_conv, b_conv, ln_gamma, ln_beta,
        patch_size=(ph, pw), block_m=16)
    out = jax.block_until_ready(out)

    assert out.shape == (B, (H // ph) * (W // pw), E), out.shape
    assert (Hp, Wp) == (H // ph, W // pw), (Hp, Wp)

    # Primary check: reference with the same bf16 input quantization as the
    # kernel's MXU operands (bf16 x bf16 products are exact in f32).
    ref_q, (Hp_r, Wp_r) = _reference(
        x, w_conv, b_conv, ln_gamma, ln_beta, (ph, pw),
        compute_dtype=jnp.bfloat16)
    assert (Hp_r, Wp_r) == (Hp, Wp)
    err_q = float(jnp.max(jnp.abs(out.astype(jnp.float32) - ref_q)))
    assert err_q < 1e-3, err_q

    # Sanity check vs the full-f32 module semantics (bf16 operand rounding).
    ref_f, _ = _reference(x, w_conv, b_conv, ln_gamma, ln_beta, (ph, pw))
    err_f = float(jnp.max(jnp.abs(out.astype(jnp.float32) - ref_f)))
    assert err_f < 5e-2, err_f

    print("KERNEL_OK")
</pallas_src>

<mosaic_0001>
module attributes {stable_mosaic.version = 11 : i64} {
  func.func @_patch_embed_kernel(%arg0: i32, %arg1: memref<16x64xbf16, #tpu.memory_space<vmem>>, %arg2: memref<64x32xbf16, #tpu.memory_space<vmem>>, %arg3: memref<1x32xf32, #tpu.memory_space<vmem>>, %arg4: memref<1x32xf32, #tpu.memory_space<vmem>>, %arg5: memref<1x32xf32, #tpu.memory_space<vmem>>, %arg6: memref<16x32xf32, #tpu.memory_space<vmem>>) attributes {dimension_semantics = [#tpu.dimension_semantics<parallel>], iteration_bounds = array<i64: 2>, scalar_prefetch = 0 : i64, scratch_operands = 0 : i64, tpu.core_type = #tpu.core_type<tc>, window_params = [{transform_indices = @transform_0, window_bounds = array<i64: 16, 64>}, {pipeline_mode = #tpu.pipeline_mode<synchronous>, transform_indices = @transform_1, window_bounds = array<i64: 64, 32>}, {pipeline_mode = #tpu.pipeline_mode<synchronous>, transform_indices = @transform_2, window_bounds = array<i64: 1, 32>}, {pipeline_mode = #tpu.pipeline_mode<synchronous>, transform_indices = @transform_3, window_bounds = array<i64: 1, 32>}, {pipeline_mode = #tpu.pipeline_mode<synchronous>, transform_indices = @transform_4, window_bounds = array<i64: 1, 32>}, {transform_indices = @transform_5, window_bounds = array<i64: 16, 32>}]} {
    %c0 = arith.constant 0 : index
    %c0_0 = arith.constant 0 : index
    %0 = vector.load %arg1[%c0, %c0_0] : memref<16x64xbf16, #tpu.memory_space<vmem>>, vector<16x64xbf16>
    %c0_1 = arith.constant 0 : index
    %c0_2 = arith.constant 0 : index
    %1 = vector.load %arg2[%c0_1, %c0_2] : memref<64x32xbf16, #tpu.memory_space<vmem>>, vector<64x32xbf16>
    %cst = arith.constant dense<0.000000e+00> : vector<16x32xf32>
    %2 = tpu.matmul %0, %1, %cst {dimension_numbers = #tpu.dot_dimension_numbers<[1], [0], [0], [1], [0, 0, 1, 1], [], []>} : vector<16x64xbf16>, vector<64x32xbf16>, vector<16x32xf32> -> vector<16x32xf32>
    %c0_3 = arith.constant 0 : index
    %c0_4 = arith.constant 0 : index
    %3 = vector.load %arg3[%c0_3, %c0_4] : memref<1x32xf32, #tpu.memory_space<vmem>>, vector<1x32xf32>
    %4 = vector.broadcast %3 : vector<1x32xf32> to vector<16x32xf32>
    %5 = arith.addf %2, %4 : vector<16x32xf32>
    %cst_5 = arith.constant dense<0.000000e+00> : vector<16xf32>
    %6 = vector.multi_reduction <add>, %5, %cst_5 [1] : vector<16x32xf32> to vector<16xf32>
    %7 = vector.shape_cast %6 : vector<16xf32> to vector<16x1xf32>
    %cst_6 = arith.constant 3.200000e+01 : f32
    %8 = vector.broadcast %cst_6 : f32 to vector<16x1xf32>
    %9 = arith.divf %7, %8 : vector<16x1xf32>
    %10 = vector.broadcast %9 : vector<16x1xf32> to vector<16x32xf32>
    %11 = arith.subf %5, %10 : vector<16x32xf32>
    %12 = arith.mulf %11, %11 : vector<16x32xf32>
    %cst_7 = arith.constant dense<0.000000e+00> : vector<16xf32>
    %13 = vector.multi_reduction <add>, %12, %cst_7 [1] : vector<16x32xf32> to vector<16xf32>
    %14 = vector.shape_cast %13 : vector<16xf32> to vector<16x1xf32>
    %cst_8 = arith.constant 3.200000e+01 : f32
    %15 = vector.broadcast %cst_8 : f32 to vector<16x1xf32>
    %16 = arith.divf %14, %15 : vector<16x1xf32>
    %cst_9 = arith.constant 9.99999974E-6 : f32
    %17 = vector.broadcast %cst_9 : f32 to vector<16x1xf32>
    %18 = arith.addf %16, %17 : vector<16x1xf32>
    %19 = math.rsqrt %18 : vector<16x1xf32>
    %20 = vector.broadcast %19 : vector<16x1xf32> to vector<16x32xf32>
    %21 = arith.mulf %11, %20 : vector<16x32xf32>
    %c0_10 = arith.constant 0 : index
    %c0_11 = arith.constant 0 : index
    %22 = vector.load %arg4[%c0_10, %c0_11] : memref<1x32xf32, #tpu.memory_space<vmem>>, vector<1x32xf32>
    %23 = vector.broadcast %22 : vector<1x32xf32> to vector<16x32xf32>
    %24 = arith.mulf %21, %23 : vector<16x32xf32>
    %c0_12 = arith.constant 0 : index
    %c0_13 = arith.constant 0 : index
    %25 = vector.load %arg5[%c0_12, %c0_13] : memref<1x32xf32, #tpu.memory_space<vmem>>, vector<1x32xf32>
    %26 = vector.broadcast %25 : vector<1x32xf32> to vector<16x32xf32>
    %27 = arith.addf %24, %26 : vector<16x32xf32>
    %c0_14 = arith.constant 0 : index
    %c0_15 = arith.constant 0 : index
    %28 = vector.load %arg6[%c0_14, %c0_15] : memref<16x32xf32, #tpu.memory_space<vmem>>, vector<16x32xf32>
    tpu.vector_store %arg6[%c0_14, %c0_15], %27 {strides = array<i32>} : memref<16x32xf32, #tpu.memory_space<vmem>>, vector<16x32xf32>,
    return
  }
  func.func @transform_0(%arg0: i32) -> (i32, i32) {
    %c0_i32 = arith.constant 0 : i32
    %c0_i32_0 = arith.constant 0 : i32
    return %arg0, %c0_i32 : i32, i32
  }
  func.func @transform_1(%arg0: i32) -> (i32, i32) {
    %c0_i32 = arith.constant 0 : i32
    %c0_i32_0 = arith.constant 0 : i32
    %c0_i32_1 = arith.constant 0 : i32
    return %c0_i32, %c0_i32_0 : i32, i32
  }
  func.func @transform_2(%arg0: i32) -> (i32, i32) {
    %c0_i32 = arith.constant 0 : i32
    %c0_i32_0 = arith.constant 0 : i32
    %c0_i32_1 = arith.constant 0 : i32
    return %c0_i32, %c0_i32_0 : i32, i32
  }
  func.func @transform_3(%arg0: i32) -> (i32, i32) {
    %c0_i32 = arith.constant 0 : i32
    %c0_i32_0 = arith.constant 0 : i32
    %c0_i32_1 = arith.constant 0 : i32
    return %c0_i32, %c0_i32_0 : i32, i32
  }
  func.func @transform_4(%arg0: i32) -> (i32, i32) {
    %c0_i32 = arith.constant 0 : i32
    %c0_i32_0 = arith.constant 0 : i32
    %c0_i32_1 = arith.constant 0 : i32
    return %c0_i32, %c0_i32_0 : i32, i32
  }
  func.func @transform_5(%arg0: i32) -> (i32, i32) {
    %c0_i32 = arith.constant 0 : i32
    %c0_i32_0 = arith.constant 0 : i32
    return %arg0, %c0_i32 : i32, i32
  }
}

</mosaic_0001>

<bundles_post_ra>
// kernel: patch_embed_forward.1
= control target key start
LH: loop header
LB: loop body
LE: loop exit
PB: predicated region body
PF: predicated region fallthrough
CT: control target
= control target key end

     0   :  { %10 = vsyncpa [#allocation3], 0  ;;  %s761_s0 = inlined_call_operand.vmem [shape: bf16[32,64], index: 0, kind: input, shape index: {}]   ;;  %s762_s1 = inlined_call_operand.vmem [shape: bf16[64,32], index: 1, kind: input, shape index: {}]   ;;  %s763_s2 = inlined_call_operand.vmem [shape: f32[1,32], index: 2, kind: input, shape index: {}]   ;;  %s764_s3 = inlined_call_operand.vmem [shape: f32[1,32], index: 3, kind: input, shape index: {}]   ;;  %s765_s4 = inlined_call_operand.vmem [shape: f32[1,32], index: 4, kind: input, shape index: {}]   ;;  %s766_s5 = inlined_call_operand.hbm [shape: f32[32,32], index: 5, kind: output, shape index: {}]  }
   0x1   :  { %12 = vsyncpa [#allocation3 + $0x1], 0  ;;  %s632_s18 = smov 0   ;;  %s634_s19 = smov 0  }
   0x2   :  { %s636_s20 = smov 0   ;;  %s638_s21 = smov 0  }
   0x3 LB: > { %s653_s22 = sadd.s32 4294967295, %s595_s21   ;;  %s442_s23 = sadd.s32 4294967294, %s595_s21   ;;  %s595_s21 = sphi %s638_s21, %s772_s21   ;;  %s591_s20 = sphi %s636_s20, %s771_s20   ;;  %s587_s19 = sphi %s634_s19, %s770_s19   ;;  %s583_s18 = sphi %s632_s18, %s769_s18  }
   0x4   : > { %s657_s24 = sadd.s32 1, %s595_s21   ;;  %s135_s25 = sadd.s32 1, %s591_s20 }
   0x5   : > { %s132_s26 = ssub.s32 %s595_s21, %s657_s24  ;;  %p145_p0 = scmp.ne.s32.totalorder %s591_s20, %s587_s19 }
   0x6   : > { %p133_p1 = scmp.eq.s32.totalorder %s132_s26, 0  ;;  %p146_p2 = scmp.eq.s32.totalorder %s653_s22, 1 }
   0x7   : > { %p151_p3 = scmp.ne.s32.totalorder %s587_s19, %s583_s18  ;;  %p152_p4 = scmp.eq.s32.totalorder %s442_s23, 1 }
   0x8   : > { %s668_s27 = scalar_select %p133_p1, %s591_s20, %s135_s25  }
   0x9   : > { %p670_p5 = por %p146_p2, %p145_p0  ;;  %p674_p6 = por %p152_p4, %p151_p3 }
   0xa   : > { %p445_p7 = scmp.ge.s32.totalorder %s595_s21, 1  ;;  %p191_p8 = scmp.lt.s32.totalorder %s595_s21, 3 }
   0xc   : > { %p192_p9 = pnand %p445_p7, %p191_p8 }
   0xd   : > { %v524_v0 = vld [vmem:[%s762_s1] sm:$0xff] (!%p192_p9)   ;;  %v597_v1 = vmov (!%p192_p9), 0.0   ;;  %v525_v2 = vld [vmem:[%s762_s1 + $0x8] sm:$0xff] (!%p192_p9)   ;;  %vm598_vm0 = vmmov (!%p192_p9), 0   ;;  %s447_s9 = sshll.u32 (!%p192_p9), %s653_s22, 1  ;;  %v526_v3 = vld [vmem:[%s762_s1 + $0x10] sm:$0xff] (!%p192_p9)  }
   0xe   : > { %195 = sbr.rel (%p192_p9) target bundleno = 576 (0x240), region = 40  ;;  %469 = vmatprep.subr.bf16.mxu0 (!%p192_p9), %v597_v1  ;;  %477 = vmatprep.mubr.msk.bf16.mxu0 (!%p192_p9), %vm598_vm0, %v597_v1  ;;  %p220_p10 = scmp.lt.s32.totalorder (!%p192_p9), %s447_s9, 3  ;;  %v527_v4 = vld [vmem:[%s762_s1 + $0x18] sm:$0xff] (!%p192_p9)   ;;  %vm273_vm1 = vcmask (!%p192_p9), 523264   ;;  %v449_v6 = vld [vmem:[%s763_s2] ss:$0 sm:$0xff] (!%p192_p9) }
   0xf   : > { %470 = vmatpush3.bf16.msra.mxu0 (!%p192_p9), %v524_v0  ;;  %vm318_vm2 = vcmask (!%p192_p9), 261120   ;;  %s216_s26 = sand.u32 (!%p192_p9), 1, %s587_s19   ;;  %v456_v32 = vld [vmem:[%s764_s3] ss:$0 sm:$0xff] (!%p192_p9)  ;;  %s463_s10 = sshll.u32 (!%p192_p9), %s653_s22, 8 }
  0x10   : > { %471 = vmatprep.subr.bf16.mxu0 (!%p192_p9), %v597_v1  ;;  %s446_s7 = sshll.u32 (!%p192_p9), %s216_s26, 4  ;;  %v457_v34 = vld [vmem:[%s765_s4] ss:$0 sm:$0xff] (!%p192_p9)  ;;  %s720_s16 = scalar_lea.sflag (!%p192_p9), [#allocation3], %s216_s26 }
  0x11   : > { %s218_s11 = scalar_lea.vmem (!%p192_p9), [#allocation2], %s446_s7  ;;  %s599_s17 = smov (!%p192_p9), [#allocation2]  }
  0x12   : > { %s537_s23 = sshll.u32 (!%p192_p9), %s599_s17, 4  ;;  %s538_s23 = int_to_ptr.vmem [resolvable:$false] %s537_s23 }
  0x13   : > { %472 = vmatpush3.bf16.msra.mxu0 (!%p192_p9), %v525_v2  ;;  %s539_s25 = scalar_lea.vmem (!%p192_p9), %s538_s23, 512 }
  0x14   : > { %473 = vmatprep.subr.bf16.mxu0 (!%p192_p9), %v597_v1 }
  0x15   : > { %s774_s9 = smov (!%p220_p10, %s447_s9), 3 }
  0x16   : > { %s448_s12 = sshll.u32 %s774_s9, 2 }
  0x17   : > { %s223_s15 = scalar_lea.vmem %s761_s0, %s448_s12  ;;  %474 = vmatpush3.bf16.msra.mxu0 %v526_v3  ;;  %s380_s12 = sshll.u32 %s218_s11, 4  ;;  %s717_s12 = int_to_ptr.vmem [resolvable:$true] %s380_s12 }
  0x18   : > { %475 = vmatprep.subr.bf16.mxu0 %v597_v1  ;;  %v528_v5 = vld [vmem:[%s223_s15] sm:$0xff]   ;;  %s715_s15 = scalar_lea.hbm %s766_s5, %s463_s10  ;;  %s533_s22 = scalar_lea.vmem %s717_s12, 256 }
  0x19   : > { %p534_p11 = scmp.ne.s32.totalorder %s717_s12, %s533_s22  ;;  %p540_p0 = scmp.lt.s32.totalorder %s717_s12, %s538_s23 }
  0x1a   : > { %p541_p1 = scmp.lt.s32.totalorder %s539_s25, %s533_s22 }
  0x1b   : > { %476 = vmatpush3.bf16.msra.mxu0 %v527_v4  ;;  %p535_p12 = pnand %p534_p11, %p670_p5 }
  0x1c   : > { %p542_p2 = por %p541_p1, %p540_p0 }
  0x1d   : > { %p536_p13 = pneg %p535_p12 }
  0x1e   : > { %478 = vmatmul.mubr.msk.bf16.vlgmr.msra.gmra.mrb[0].mxu0 %vm273_vm1, %v528_v5 }
  0x1f   : > { %p543_p3 = pnand %p542_p2, %p536_p13 }
  0xf1   : > { %v311_v7 = vpop.f32.mrb[0].mxu0 }
  0xf2   : > { %v312_v8 = vadd.f32 %v449_v6, %v311_v7  ;;  %v479_v9 = vpop.f32.mrb[1].mxu0 }
  0xf3   : > { %v314_v10 = vpop.f32.mrb[2].mxu0 }
  0xf4   : > { %v315_v11 = vadd.f32 %v449_v6, %v314_v10  ;;  %v480_v12 = vpop.f32.mrb[3].mxu0  ;;  %v319_v13 = vsel %vm318_vm2, %v312_v8, 0.0 }
  0xf5   : > { %320 = vadd.xlane.f32.xlu0 %v319_v13 }
  0xf6   : > { %v322_v14 = vsel %vm318_vm2, %v315_v11, 0.0 }
  0xf9   : > { %323 = vadd.xlane.f32.xlu0 %v322_v14 }
 0x182   : > { %v321_v15 = vpop.xlane.xlu0 %320 }
 0x183   : > { %v326_v16 = vmul.f32 0.03125, %v321_v15 }
 0x185   : > { %v328_v17 = vsub.f32 %v312_v8, %v326_v16 }
 0x186   : > { %v324_v18 = vpop.xlane.xlu0 %323 }
 0x187   : > { %v327_v19 = vmul.f32 0.03125, %v324_v18  ;;  %v330_v20 = vmul.f32 %v328_v17, %v328_v17 }
 0x189   : > { %v329_v21 = vsub.f32 %v315_v11, %v327_v19  ;;  %v332_v22 = vsel %vm318_vm2, %v330_v20, 0.0 }
 0x18a   : > { %333 = vadd.xlane.f32.xlu1 %v332_v22 }
 0x18b   : > { %v331_v23 = vmul.f32 %v329_v21, %v329_v21 }
 0x18d   : > { %v335_v24 = vsel %vm318_vm2, %v331_v23, 0.0 }
 0x18e   : > { %336 = vadd.xlane.f32.xlu1 %v335_v24 }
 0x217   : > { %v334_v25 = vpop.xlane.xlu1 %333 }
 0x218   : > { %v338_v26 = vmul.f32 0.03125, %v334_v25 }
 0x21a   : > { %v340_v27 = vadd.f32 1e-05, %v338_v26 }
 0x21b   : > { %v337_v28 = vpop.xlane.xlu1 %336 }
 0x21c   : > { %529 = vrsqrt.f32 %v340_v27  ;;  %v339_v29 = vmul.f32 0.03125, %v337_v28 }
 0x21e   : > { %v341_v30 = vadd.f32 1e-05, %v339_v29 }
 0x220   : > { %531 = vrsqrt.f32 %v341_v30 }
 0x226   : > { %v530_v31 = vpop.eup %529 }
 0x227   : > { %v344_v33 = vmul.f32 %v530_v31, %v328_v17 }
 0x229   : > { %v353_v35 = vmul.f32 %v456_v32, %v344_v33 }
 0x22a   : > { %v532_v36 = vpop.eup %531 }
 0x22b   : > { %v345_v37 = vmul.f32 %v532_v36, %v329_v21  ;;  %v362_v38 = vadd.f32 %v457_v34, %v353_v35 }
 0x22d   : > { %v354_v39 = vmul.f32 %v456_v32, %v345_v37  ;;  %364 = vst.msk [vmem:[%s218_s11] sm:$0xff] %vm318_vm2, %v362_v38 }
 0x22f   : > { %v363_v40 = vadd.f32 %v457_v34, %v354_v39 }
 0x231   : > { %365 = vst.msk [vmem:[%s218_s11 + $0x8] sm:$0xff] %vm318_vm2, %v363_v40 }
 0x232   : > { %546 = shalt.err (!%p543_p3)
}
 0x233   : > { %s547_s26 = scalar_lea.hbm %s715_s15, 256  ;;  %s551_s7 = scalar_lea.hbm %s766_s5, 512 }
 0x234   : > { %p548_p4 = scmp.ne.s32.totalorder %s715_s15, %s547_s26  ;;  %p552_p9 = scmp.lt.u32.totalorder %s715_s15, %s766_s5 }
 0x235   : > { %p553_p10 = scmp.lt.u32.totalorder %s551_s7, %s547_s26  ;;  %p555_p12 = scmp.lt.u32.totalorder %s547_s26, %s715_s15 }
 0x236   : > { %p549_p7 = pnand %p548_p4, %p670_p5 }
 0x237   : > { %p554_p11 = por %p553_p10, %p552_p9 }
 0x238   : > { %p550_p8 = pneg %p549_p7 }
 0x239   : > { %p556_p13 = por %p555_p12, %p554_p11 }
 0x23b   : > { %p557_p0 = pnand %p556_p13, %p550_p8 }
 0x23d   : > { %560 = shalt.err (!%p557_p0)
}
 0x23e   : > { %s600_s10 = smov 128   ;;  %s601_s11 = smov 8  }
 0x23f   : > { %481 = dma.vmem_to_hbm [thread:$0]  (%p670_p5), %s717_s12, 256, %s715_s15, %s720_s16, %s600_s10, %s600_s10, %s601_s11  }
 0x240 PF: > { %p487_p1 = scmp.ge.s32.totalorder %s595_s21, 2  ;;  %s395_s13 = sand.u32 1, %s583_s18  }
 0x241   : > { %s396_s14 = scalar_lea.sflag [#allocation3], %s395_s13 }
 0x242   : > { %p484_p2 = pnand %p487_p1, %p674_p6 }
 0x244   : > { %578 = dma.done.wait (!%p484_p2), %s396_s14, 256  }
 0x245   : > { %580 = vsyncadd (!%p484_p2), %s396_s14, 4294967040  ;;  %p15_p3 = scmp.ge.s32.totalorder %s657_s24, 4   ;;  %s769_s18 = smov %s587_s19 }
 0x246   : > { %s770_s19 = smov %s591_s20  ;;  %s771_s20 = smov %s668_s27 }
 0x247   : > { %s772_s21 = smov %s657_s24  ;;  %17 = sbr.rel (!%p15_p3) target bundleno = 3 (0x3), region = 75 }
 0x24e   :  { %401 = vsyncpa [#allocation3], 1 }
 0x24f   :  { %403 = vsyncpa [#allocation3 + $0x1], 1 }

</bundles_post_ra>
